<compile_context>
chip_gen: v7x
topology: tpu7x:2x2x1
jax: 0.10.0
libtpu: 0.0.40
codegen_flags: <defaults>
</compile_context>

<pallas_src>
import numpy as np
import jax
import jax.numpy as jnp
from jax.experimental import pallas as pl
from jax.experimental.pallas import tpu as pltpu

# ---------------- problem sizes (small, consistent with the module) -----------
N, CIN, H, W = 2, 4, 16, 16       # input NCHW
COUT = 8                          # Down(in_channels=4, out_channels=8)
HP, WP = H // 2, W // 2           # after MaxPool2d(2)

C1 = N * WP * CIN                 # lane width of pooled slab   = 64
C2 = N * WP * COUT                # lane width of conv outputs  = 128


# ---------------------------- Pallas kernel -----------------------------------
def down_kernel(win_ref, k1_ref, b1_ref, k2_ref, b2_ref, o_ref,
                lhs1_ref, lhs2_ref):
    # ---- MaxPool2d(2): max over the 4 pre-gathered window positions ----------
    pooled = jnp.maximum(jnp.maximum(win_ref[0], win_ref[1]),
                         jnp.maximum(win_ref[2], win_ref[3]))      # (HP, C1)

    # ---- Conv1: assemble fused LHS = [view(ky=0) | view(ky=1) | view(ky=2)] ---
    # view(ky)[h, :] = pooled[h + ky - 1, :]   (zero rows = H padding)
    zero1 = jnp.zeros((1, C1), jnp.float32)
    lhs1_ref[pl.ds(0, 1), pl.ds(0, C1)] = zero1                 # top pad (ky=0)
    lhs1_ref[pl.ds(1, HP - 1), pl.ds(0, C1)] = pooled[:HP - 1]
    lhs1_ref[:, pl.ds(C1, C1)] = pooled                         # ky=1 (no shift)
    lhs1_ref[pl.ds(0, HP - 1), pl.ds(2 * C1, C1)] = pooled[1:]
    lhs1_ref[pl.ds(HP - 1, 1), pl.ds(2 * C1, C1)] = zero1       # bottom pad (ky=2)

    # ---- Conv1: single MXU push (HP, 3*C1) @ (3*C1, C2) + bias + ReLU ---------
    h1 = jnp.dot(lhs1_ref[...], k1_ref[...],
                 preferred_element_type=jnp.float32)
    h1 = jnp.maximum(h1 + b1_ref[...], 0.0)                     # (HP, C2)

    # ---- Conv2: same fused-LHS trick (all slices are full 128-lane tiles) -----
    zero2 = jnp.zeros((1, C2), jnp.float32)
    lhs2_ref[pl.ds(0, 1), pl.ds(0, C2)] = zero2
    lhs2_ref[pl.ds(1, HP - 1), pl.ds(0, C2)] = h1[:HP - 1]
    lhs2_ref[:, pl.ds(C2, C2)] = h1
    lhs2_ref[pl.ds(0, HP - 1), pl.ds(2 * C2, C2)] = h1[1:]
    lhs2_ref[pl.ds(HP - 1, 1), pl.ds(2 * C2, C2)] = zero2

    h2 = jnp.dot(lhs2_ref[...], k2_ref[...],
                 preferred_element_type=jnp.float32)
    # Output is (HP, C2) = (8, 128): lane-dense, unmasked stores.
    o_ref[...] = jnp.maximum(h2 + b2_ref[...], 0.0)


# ------------------------- parameter preprocessing (glue) ----------------------
def build_fused_taps(w_oihw, cin, cout):
    """Fused RHS of shape (3 * N*WP*cin, N*WP*cout).

    Rows indexed by (ky, n, wi, ci), cols by (n, wo, co):
      K[ky, n, wi, ci ; n, wo, co] = W[co, ci, ky, wi - wo + 1]
    for wi - wo + 1 in {0,1,2}, block-diagonal over the batch index n.
    This folds the kx shift + W-axis zero padding (and the kx sum) into the
    weights, so the kernel only needs the three ky row shifts.
    """
    w_np = np.asarray(w_oihw, dtype=np.float32)            # (cout, cin, 3, 3)
    ci_lanes = N * WP * cin
    co_lanes = N * WP * cout
    k = np.zeros((3, ci_lanes, co_lanes), np.float32)
    for ky in range(3):
        for kx in range(3):
            tap = w_np[:, :, ky, kx].T                      # (cin, cout)
            for b in range(N):
                for wo in range(WP):
                    wi = wo + kx - 1
                    if 0 <= wi < WP:
                        r0 = b * WP * cin + wi * cin
                        c0 = b * WP * cout + wo * cout
                        k[ky, r0:r0 + cin, c0:c0 + cout] = tap
    return jnp.asarray(k.reshape(3 * ci_lanes, co_lanes))


# ------------------------------- wrapper ---------------------------------------
def down_forward(x_nchw, w1, b1, w2, b2):
    # -- glue: NCHW -> (4, HP, N*WP*CIN) 2x2-window gather (pure data movement) --
    x_nhwc = jnp.transpose(x_nchw, (0, 2, 3, 1))                    # (N,H,W,C)
    r = x_nhwc.reshape(N, HP, 2, WP, 2, CIN)                        # n,hp,py,wp,px,c
    win = jnp.transpose(r, (2, 4, 1, 0, 3, 5))                      # py,px,hp,n,wp,c
    win = win.reshape(4, HP, C1)

    k1 = build_fused_taps(w1, CIN, COUT)                            # (3*C1, C2)
    k2 = build_fused_taps(w2, COUT, COUT)                           # (3*C2, C2)
    b1row = jnp.tile(b1.astype(jnp.float32), N * WP).reshape(1, C2)
    b2row = jnp.tile(b2.astype(jnp.float32), N * WP).reshape(1, C2)

    out2d = pl.pallas_call(
        down_kernel,
        out_shape=jax.ShapeDtypeStruct((HP, C2), jnp.float32),
        grid_spec=pltpu.PrefetchScalarGridSpec(
            num_scalar_prefetch=0,
            grid=(1,),                      # whole problem in one step (N folded)
            in_specs=[
                pl.BlockSpec((4, HP, C1), lambda i: (0, 0, 0)),
                pl.BlockSpec((3 * C1, C2), lambda i: (0, 0)),
                pl.BlockSpec((1, C2), lambda i: (0, 0)),
                pl.BlockSpec((3 * C2, C2), lambda i: (0, 0)),
                pl.BlockSpec((1, C2), lambda i: (0, 0)),
            ],
            out_specs=pl.BlockSpec((HP, C2), lambda i: (0, 0)),
            scratch_shapes=[
                pltpu.VMEM((HP, 3 * C1), jnp.float32),   # fused LHS, conv1
                pltpu.VMEM((HP, 3 * C2), jnp.float32),   # fused LHS, conv2
            ],
        ),
        compiler_params=pltpu.CompilerParams(
            dimension_semantics=("arbitrary",)),
    )(win, k1, b1row, k2, b2row)

    # -- glue: (HP, N*WP*COUT) -> NCHW -------------------------------------------
    out = out2d.reshape(HP, N, WP, COUT)
    return jnp.transpose(out, (1, 3, 0, 2))                         # (N,COUT,HP,WP)


# --------------------------- pure-JAX reference ---------------------------------
def down_reference(x, w1, b1, w2, b2):
    xp = jax.lax.reduce_window(x, -jnp.inf, jax.lax.max,
                               (1, 1, 2, 2), (1, 1, 2, 2), "VALID")
    dn = ("NCHW", "OIHW", "NCHW")
    y = jax.lax.conv_general_dilated(xp, w1, (1, 1), ((1, 1), (1, 1)),
                                     dimension_numbers=dn) + b1[None, :, None, None]
    y = jnp.maximum(y, 0.0)
    y = jax.lax.conv_general_dilated(y, w2, (1, 1), ((1, 1), (1, 1)),
                                     dimension_numbers=dn) + b2[None, :, None, None]
    return jnp.maximum(y, 0.0)


# ---------------------------------- main ----------------------------------------
if __name__ == "__main__":
    key = jax.random.PRNGKey(0)
    kx_, kw1, kb1, kw2, kb2 = jax.random.split(key, 5)

    x = jax.random.normal(kx_, (N, CIN, H, W), dtype=jnp.float32)
    w1 = 0.1 * jax.random.normal(kw1, (COUT, CIN, 3, 3), dtype=jnp.float32)
    b1 = 0.1 * jax.random.normal(kb1, (COUT,), dtype=jnp.float32)
    w2 = 0.1 * jax.random.normal(kw2, (COUT, COUT, 3, 3), dtype=jnp.float32)
    b2 = 0.1 * jax.random.normal(kb2, (COUT,), dtype=jnp.float32)

    out = down_forward(x, w1, b1, w2, b2)
    out = jax.block_until_ready(out)

    ref = jax.block_until_ready(down_reference(x, w1, b1, w2, b2))
    assert out.shape == (N, COUT, HP, WP) and out.dtype == jnp.float32
    np.testing.assert_allclose(np.asarray(out), np.asarray(ref),
                               rtol=2e-2, atol=2e-2)

    print("KERNEL_OK")
</pallas_src>

<mosaic_0001>
module attributes {stable_mosaic.version = 11 : i64} {
  func.func @down_kernel(%arg0: i32, %arg1: memref<4x8x64xf32, #tpu.memory_space<vmem>>, %arg2: memref<192x128xf32, #tpu.memory_space<vmem>>, %arg3: memref<1x128xf32, #tpu.memory_space<vmem>>, %arg4: memref<384x128xf32, #tpu.memory_space<vmem>>, %arg5: memref<1x128xf32, #tpu.memory_space<vmem>>, %arg6: memref<8x128xf32, #tpu.memory_space<vmem>>, %arg7: memref<8x192xf32, #tpu.memory_space<vmem>>, %arg8: memref<8x384xf32, #tpu.memory_space<vmem>>) attributes {dimension_semantics = [#tpu.dimension_semantics<arbitrary>], iteration_bounds = array<i64: 1>, scalar_prefetch = 0 : i64, scratch_operands = 2 : i64, tpu.core_type = #tpu.core_type<tc>, window_params = [{pipeline_mode = #tpu.pipeline_mode<synchronous>, transform_indices = @transform_0, window_bounds = array<i64: 4, 8, 64>}, {pipeline_mode = #tpu.pipeline_mode<synchronous>, transform_indices = @transform_1, window_bounds = array<i64: 192, 128>}, {pipeline_mode = #tpu.pipeline_mode<synchronous>, transform_indices = @transform_2, window_bounds = array<i64: 1, 128>}, {pipeline_mode = #tpu.pipeline_mode<synchronous>, transform_indices = @transform_3, window_bounds = array<i64: 384, 128>}, {pipeline_mode = #tpu.pipeline_mode<synchronous>, transform_indices = @transform_4, window_bounds = array<i64: 1, 128>}, {pipeline_mode = #tpu.pipeline_mode<synchronous>, transform_indices = @transform_5, window_bounds = array<i64: 8, 128>}]} {
    %c0 = arith.constant 0 : index
    %c0_0 = arith.constant 0 : index
    %c0_1 = arith.constant 0 : index
    %0 = vector.load %arg1[%c0, %c0_0, %c0_1] : memref<4x8x64xf32, #tpu.memory_space<vmem>>, vector<1x8x64xf32>
    %1 = vector.shape_cast %0 : vector<1x8x64xf32> to vector<8x64xf32>
    %c1 = arith.constant 1 : index
    %c0_2 = arith.constant 0 : index
    %c0_3 = arith.constant 0 : index
    %2 = vector.load %arg1[%c1, %c0_2, %c0_3] : memref<4x8x64xf32, #tpu.memory_space<vmem>>, vector<1x8x64xf32>
    %3 = vector.shape_cast %2 : vector<1x8x64xf32> to vector<8x64xf32>
    %4 = arith.maximumf %1, %3 : vector<8x64xf32>
    %c2 = arith.constant 2 : index
    %c0_4 = arith.constant 0 : index
    %c0_5 = arith.constant 0 : index
    %5 = vector.load %arg1[%c2, %c0_4, %c0_5] : memref<4x8x64xf32, #tpu.memory_space<vmem>>, vector<1x8x64xf32>
    %6 = vector.shape_cast %5 : vector<1x8x64xf32> to vector<8x64xf32>
    %c3 = arith.constant 3 : index
    %c0_6 = arith.constant 0 : index
    %c0_7 = arith.constant 0 : index
    %7 = vector.load %arg1[%c3, %c0_6, %c0_7] : memref<4x8x64xf32, #tpu.memory_space<vmem>>, vector<1x8x64xf32>
    %8 = vector.shape_cast %7 : vector<1x8x64xf32> to vector<8x64xf32>
    %9 = arith.maximumf %6, %8 : vector<8x64xf32>
    %10 = arith.maximumf %4, %9 : vector<8x64xf32>
    %cst = arith.constant 0.000000e+00 : f32
    %11 = vector.broadcast %cst : f32 to vector<1x64xf32>
    %c0_8 = arith.constant 0 : index
    %c0_9 = arith.constant 0 : index
    %12 = vector.load %arg7[%c0_8, %c0_9] : memref<8x192xf32, #tpu.memory_space<vmem>>, vector<1x64xf32>
    tpu.vector_store %arg7[%c0_8, %c0_9], %11 {strides = array<i32>} : memref<8x192xf32, #tpu.memory_space<vmem>>, vector<1x64xf32>,
    %13 = vector.extract_strided_slice %10 {offsets = [0, 0], sizes = [7, 64], strides = [1, 1]} : vector<8x64xf32> to vector<7x64xf32>
    %c1_10 = arith.constant 1 : index
    %c0_11 = arith.constant 0 : index
    %14 = vector.load %arg7[%c1_10, %c0_11] : memref<8x192xf32, #tpu.memory_space<vmem>>, vector<7x64xf32>
    tpu.vector_store %arg7[%c1_10, %c0_11], %13 {strides = array<i32>} : memref<8x192xf32, #tpu.memory_space<vmem>>, vector<7x64xf32>,
    %c0_12 = arith.constant 0 : index
    %c64 = arith.constant 64 : index
    %15 = vector.load %arg7[%c0_12, %c64] : memref<8x192xf32, #tpu.memory_space<vmem>>, vector<8x64xf32>
    tpu.vector_store %arg7[%c0_12, %c64], %10 {strides = array<i32>} : memref<8x192xf32, #tpu.memory_space<vmem>>, vector<8x64xf32>,
    %16 = vector.extract_strided_slice %10 {offsets = [1, 0], sizes = [7, 64], strides = [1, 1]} : vector<8x64xf32> to vector<7x64xf32>
    %c0_13 = arith.constant 0 : index
    %c128 = arith.constant 128 : index
    %17 = vector.load %arg7[%c0_13, %c128] : memref<8x192xf32, #tpu.memory_space<vmem>>, vector<7x64xf32>
    tpu.vector_store %arg7[%c0_13, %c128], %16 {strides = array<i32>} : memref<8x192xf32, #tpu.memory_space<vmem>>, vector<7x64xf32>,
    %c7 = arith.constant 7 : index
    %c128_14 = arith.constant 128 : index
    %18 = vector.load %arg7[%c7, %c128_14] : memref<8x192xf32, #tpu.memory_space<vmem>>, vector<1x64xf32>
    tpu.vector_store %arg7[%c7, %c128_14], %11 {strides = array<i32>} : memref<8x192xf32, #tpu.memory_space<vmem>>, vector<1x64xf32>,
    %c0_15 = arith.constant 0 : index
    %c0_16 = arith.constant 0 : index
    %19 = vector.load %arg7[%c0_15, %c0_16] : memref<8x192xf32, #tpu.memory_space<vmem>>, vector<8x192xf32>
    %c0_17 = arith.constant 0 : index
    %c0_18 = arith.constant 0 : index
    %20 = vector.load %arg2[%c0_17, %c0_18] : memref<192x128xf32, #tpu.memory_space<vmem>>, vector<192x128xf32>
    %cst_19 = arith.constant dense<0.000000e+00> : vector<8x128xf32>
    %21 = tpu.matmul %19, %20, %cst_19 {dimension_numbers = #tpu.dot_dimension_numbers<[1], [0], [0], [1], [0, 0, 1, 1], [], []>} : vector<8x192xf32>, vector<192x128xf32>, vector<8x128xf32> -> vector<8x128xf32>
    %c0_20 = arith.constant 0 : index
    %c0_21 = arith.constant 0 : index
    %22 = vector.load %arg3[%c0_20, %c0_21] : memref<1x128xf32, #tpu.memory_space<vmem>>, vector<1x128xf32>
    %23 = vector.broadcast %22 : vector<1x128xf32> to vector<8x128xf32>
    %24 = arith.addf %21, %23 : vector<8x128xf32>
    %cst_22 = arith.constant 0.000000e+00 : f32
    %25 = vector.broadcast %cst_22 : f32 to vector<8x128xf32>
    %26 = arith.maximumf %24, %25 : vector<8x128xf32>
    %cst_23 = arith.constant 0.000000e+00 : f32
    %27 = vector.broadcast %cst_23 : f32 to vector<1x128xf32>
    %c0_24 = arith.constant 0 : index
    %c0_25 = arith.constant 0 : index
    %28 = vector.load %arg8[%c0_24, %c0_25] : memref<8x384xf32, #tpu.memory_space<vmem>>, vector<1x128xf32>
    tpu.vector_store %arg8[%c0_24, %c0_25], %27 {strides = array<i32>} : memref<8x384xf32, #tpu.memory_space<vmem>>, vector<1x128xf32>,
    %29 = vector.extract_strided_slice %26 {offsets = [0, 0], sizes = [7, 128], strides = [1, 1]} : vector<8x128xf32> to vector<7x128xf32>
    %c1_26 = arith.constant 1 : index
    %c0_27 = arith.constant 0 : index
    %30 = vector.load %arg8[%c1_26, %c0_27] : memref<8x384xf32, #tpu.memory_space<vmem>>, vector<7x128xf32>
    tpu.vector_store %arg8[%c1_26, %c0_27], %29 {strides = array<i32>} : memref<8x384xf32, #tpu.memory_space<vmem>>, vector<7x128xf32>,
    %c0_28 = arith.constant 0 : index
    %c128_29 = arith.constant 128 : index
    %31 = vector.load %arg8[%c0_28, %c128_29] : memref<8x384xf32, #tpu.memory_space<vmem>>, vector<8x128xf32>
    tpu.vector_store %arg8[%c0_28, %c128_29], %26 {strides = array<i32>} : memref<8x384xf32, #tpu.memory_space<vmem>>, vector<8x128xf32>,
    %32 = vector.extract_strided_slice %26 {offsets = [1, 0], sizes = [7, 128], strides = [1, 1]} : vector<8x128xf32> to vector<7x128xf32>
    %c0_30 = arith.constant 0 : index
    %c256 = arith.constant 256 : index
    %33 = vector.load %arg8[%c0_30, %c256] : memref<8x384xf32, #tpu.memory_space<vmem>>, vector<7x128xf32>
    tpu.vector_store %arg8[%c0_30, %c256], %32 {strides = array<i32>} : memref<8x384xf32, #tpu.memory_space<vmem>>, vector<7x128xf32>,
    %c7_31 = arith.constant 7 : index
    %c256_32 = arith.constant 256 : index
    %34 = vector.load %arg8[%c7_31, %c256_32] : memref<8x384xf32, #tpu.memory_space<vmem>>, vector<1x128xf32>
    tpu.vector_store %arg8[%c7_31, %c256_32], %27 {strides = array<i32>} : memref<8x384xf32, #tpu.memory_space<vmem>>, vector<1x128xf32>,
    %c0_33 = arith.constant 0 : index
    %c0_34 = arith.constant 0 : index
    %35 = vector.load %arg8[%c0_33, %c0_34] : memref<8x384xf32, #tpu.memory_space<vmem>>, vector<8x384xf32>
    %c0_35 = arith.constant 0 : index
    %c0_36 = arith.constant 0 : index
    %36 = vector.load %arg4[%c0_35, %c0_36] : memref<384x128xf32, #tpu.memory_space<vmem>>, vector<384x128xf32>
    %cst_37 = arith.constant dense<0.000000e+00> : vector<8x128xf32>
    %37 = tpu.matmul %35, %36, %cst_37 {dimension_numbers = #tpu.dot_dimension_numbers<[1], [0], [0], [1], [0, 0, 1, 1], [], []>} : vector<8x384xf32>, vector<384x128xf32>, vector<8x128xf32> -> vector<8x128xf32>
    %c0_38 = arith.constant 0 : index
    %c0_39 = arith.constant 0 : index
    %38 = vector.load %arg5[%c0_38, %c0_39] : memref<1x128xf32, #tpu.memory_space<vmem>>, vector<1x128xf32>
    %39 = vector.broadcast %38 : vector<1x128xf32> to vector<8x128xf32>
    %40 = arith.addf %37, %39 : vector<8x128xf32>
    %cst_40 = arith.constant 0.000000e+00 : f32
    %41 = vector.broadcast %cst_40 : f32 to vector<8x128xf32>
    %42 = arith.maximumf %40, %41 : vector<8x128xf32>
    %c0_41 = arith.constant 0 : index
    %c0_42 = arith.constant 0 : index
    %43 = vector.load %arg6[%c0_41, %c0_42] : memref<8x128xf32, #tpu.memory_space<vmem>>, vector<8x128xf32>
    tpu.vector_store %arg6[%c0_41, %c0_42], %42 {strides = array<i32>} : memref<8x128xf32, #tpu.memory_space<vmem>>, vector<8x128xf32>,
    return
  }
  func.func @transform_0(%arg0: i32) -> (i32, i32, i32) {
    %c0_i32 = arith.constant 0 : i32
    %c0_i32_0 = arith.constant 0 : i32
    %c0_i32_1 = arith.constant 0 : i32
    %c0_i32_2 = arith.constant 0 : i32
    return %c0_i32, %c0_i32_0, %c0_i32_1 : i32, i32, i32
  }
  func.func @transform_1(%arg0: i32) -> (i32, i32) {
    %c0_i32 = arith.constant 0 : i32
    %c0_i32_0 = arith.constant 0 : i32
    %c0_i32_1 = arith.constant 0 : i32
    return %c0_i32, %c0_i32_0 : i32, i32
  }
  func.func @transform_2(%arg0: i32) -> (i32, i32) {
    %c0_i32 = arith.constant 0 : i32
    %c0_i32_0 = arith.constant 0 : i32
    %c0_i32_1 = arith.constant 0 : i32
    return %c0_i32, %c0_i32_0 : i32, i32
  }
  func.func @transform_3(%arg0: i32) -> (i32, i32) {
    %c0_i32 = arith.constant 0 : i32
    %c0_i32_0 = arith.constant 0 : i32
    %c0_i32_1 = arith.constant 0 : i32
    return %c0_i32, %c0_i32_0 : i32, i32
  }
  func.func @transform_4(%arg0: i32) -> (i32, i32) {
    %c0_i32 = arith.constant 0 : i32
    %c0_i32_0 = arith.constant 0 : i32
    %c0_i32_1 = arith.constant 0 : i32
    return %c0_i32, %c0_i32_0 : i32, i32
  }
  func.func @transform_5(%arg0: i32) -> (i32, i32) {
    %c0_i32 = arith.constant 0 : i32
    %c0_i32_0 = arith.constant 0 : i32
    %c0_i32_1 = arith.constant 0 : i32
    return %c0_i32, %c0_i32_0 : i32, i32
  }
}

</mosaic_0001>

<bundles_post_ra>
// kernel: tpu_custom_call.1
= control target key start
LH: loop header
LB: loop body
LE: loop exit
PB: predicated region body
PF: predicated region fallthrough
CT: control target
= control target key end

     0   :  { %10 = vsyncpa [#allocation5], 0  ;;  %s844_s0 = inlined_call_operand.hbm [shape: f32[4,8,64], index: 0, kind: input, shape index: {}]   ;;  %s845_s1 = inlined_call_operand.hbm [shape: f32[192,128], index: 1, kind: input, shape index: {}]   ;;  %s846_s2 = inlined_call_operand.vmem [shape: f32[1,128], index: 2, kind: input, shape index: {}]   ;;  %s847_s3 = inlined_call_operand.hbm [shape: f32[384,128], index: 3, kind: input, shape index: {}]   ;;  %s848_s4 = inlined_call_operand.vmem [shape: f32[1,128], index: 4, kind: input, shape index: {}]   ;;  %s849_s5 = inlined_call_operand.hbm [shape: f32[8,128], index: 5, kind: output, shape index: {}]  }
   0x1   :  { %11 = vsyncpa [#allocation8], 0 }
   0x2   :  { %12 = vsyncpa [#allocation6], 0  ;;  %s709_s18 = smov [#allocation7]   ;;  %s710_s20 = smov [#allocation4]  }
   0x3   :  { %s30_s19 = sshll.u32 %s709_s18, 4  ;;  %s18_s21 = sshll.u32 %s710_s20, 4  ;;  %s31_s19 = int_to_ptr.vmem [resolvable:$true] %s30_s19  ;;  %s749_s21 = int_to_ptr.vmem [resolvable:$true] %s18_s21 }
   0x4   :  { %s615_s24 = scalar_lea.hbm %s845_s1, 3072 }
   0x5   :  { %p616_p0 = scmp.ne.s32.totalorder %s845_s1, %s615_s24  ;;  %p619_p1 = scmp.lt.u32.totalorder %s615_s24, %s845_s1 }
   0x7   :  { %p621_p2 = pnand %p619_p1, %p616_p0 }
   0x9   :  { %624 = shalt.err (!%p621_p2)
}
   0xa   :  { %s625_s29 = scalar_lea.vmem %s31_s19, 3072  ;;  %p630_p4 = scmp.lt.s32.totalorder %s31_s19, %s31_s19 }
   0xb   :  { %p626_p3 = scmp.ne.s32.totalorder %s31_s19, %s625_s29  ;;  %p631_p5 = scmp.lt.s32.totalorder %s625_s29, %s625_s29 }
   0xd   :  { %p632_p6 = por %p631_p5, %p630_p4 }
   0xf   :  { %p633_p7 = pnand %p632_p6, %p626_p3 }
  0x11   :  { %636 = shalt.err (!%p633_p7)
}
  0x12   :  { %s711_s30 = smov 128   ;;  %s712_s6 = smov 8  }
  0x13   :  { %36 = dma.hbm_to_vmem [thread:$0]  %s845_s1, 3072, %s31_s19, [#allocation8], %s711_s30, %s711_s30, %s712_s6  }
  0x14   :  { %s637_s11 = scalar_lea.hbm %s844_s0, 512 }
  0x15   :  { %p638_p8 = scmp.ne.s32.totalorder %s844_s0, %s637_s11  ;;  %p641_p9 = scmp.lt.u32.totalorder %s637_s11, %s844_s0 }
  0x17   :  { %p643_p10 = pnand %p641_p9, %p638_p8 }
  0x19   :  { %646 = shalt.err (!%p643_p10)
}
  0x1a   :  { %s647_s16 = scalar_lea.vmem %s749_s21, 512  ;;  %p652_p12 = scmp.lt.s32.totalorder %s749_s21, %s749_s21 }
  0x1b   :  { %p648_p11 = scmp.ne.s32.totalorder %s749_s21, %s647_s16  ;;  %p653_p13 = scmp.lt.s32.totalorder %s647_s16, %s647_s16 }
  0x1d   :  { %p654_p0 = por %p653_p13, %p652_p12 }
  0x1f   :  { %p655_p1 = pnand %p654_p0, %p648_p11 }
  0x21   :  { %658 = shalt.err (!%p655_p1)
}
  0x22   :  { %24 = dma.hbm_to_vmem [thread:$0]  %s844_s0, 512, %s749_s21, [#allocation5], %s711_s30, %s711_s30, %s712_s6  }
  0x23   :  { %s713_s18 = smov [#allocation9]   ;;  %s659_s23 = scalar_lea.hbm %s847_s3, 6144 }
  0x24   :  { %s44_s19 = sshll.u32 %s713_s18, 4  ;;  %p660_p2 = scmp.ne.s32.totalorder %s847_s3, %s659_s23  ;;  %s45_s19 = int_to_ptr.vmem [resolvable:$true] %s44_s19 }
  0x25   :  { %p663_p3 = scmp.lt.u32.totalorder %s659_s23, %s847_s3 }
  0x27   :  { %p665_p4 = pnand %p663_p3, %p660_p2 }
  0x29   :  { %668 = shalt.err (!%p665_p4)
}
  0x2a   :  { %s669_s28 = scalar_lea.vmem %s45_s19, 6144  ;;  %p674_p6 = scmp.lt.s32.totalorder %s45_s19, %s45_s19 }
  0x2b   :  { %p670_p5 = scmp.ne.s32.totalorder %s45_s19, %s669_s28  ;;  %p675_p7 = scmp.lt.s32.totalorder %s669_s28, %s669_s28 }
  0x2d   :  { %p676_p8 = por %p675_p7, %p674_p6 }
  0x2f   :  { %p677_p9 = pnand %p676_p8, %p670_p5 }
  0x31   :  { %680 = shalt.err (!%p677_p9)
}
  0x32   :  { %50 = dma.hbm_to_vmem [thread:$0]  %s847_s3, 6144, %s45_s19, [#allocation8], %s711_s30, %s711_s30, %s712_s6  }
  0x33   :  { %703 = dma.done.wait [#allocation5], 512  }
  0x34   :  { %704 = vsyncadd [#allocation5], 4294966784 }
  0x35   :  { %705 = dma.done.wait [#allocation8], 9216  }
  0x36   :  { %706 = vsyncadd [#allocation8], 4294958080  ;;  %vm72_vm0 = vcmask 516096   ;;  %v714_v0 = vmov 0.0|0.0   ;;  %v715_v1 = vmov 0.0   ;;  %v62_v2 = vld [vmem:[#allocation4] sm:$0xff] }
  0x37   :  { %513 = vmatprep.subr.bf16.mxu0 %v714_v0  ;;  %73 = vst.msk [vmem:[#allocation2] sm:$0x1] %vm72_vm0, %v715_v1  ;;  %88 = vst.msk [vmem:[#allocation2 + $0xf] sm:$0x1] %vm72_vm0, %v715_v1  ;;  %v64_v3 = vld [vmem:[#allocation4 + $0x8] sm:$0xff]  ;;  %v67_v4 = vld [vmem:[#allocation4 + $0x10] sm:$0xff] }
  0x38   :  { %197 = vst [vmem:[#allocation3] sm:$0x1] %v715_v1  ;;  %206 = vst [vmem:[#allocation3 + $0x17] sm:$0x1] %v715_v1  ;;  %v65_v5 = vmax.f32 %v62_v2, %v64_v3  ;;  %v69_v6 = vld [vmem:[#allocation4 + $0x18] sm:$0xff]  ;;  %v91_v7 = vld [vmem:[#allocation7] sm:$0xff] }
  0x39   :  { %v92_v8 = vld [vmem:[#allocation7 + $0x8] sm:$0xff]  ;;  %v70_v9 = vmax.f32 %v67_v4, %v69_v6  ;;  %v93_v11 = vld [vmem:[#allocation7 + $0x10] sm:$0xff]  ;;  %v94_v12 = vld [vmem:[#allocation7 + $0x18] sm:$0xff]  ;;  %vm86_vm1 = vcmask 522240   ;;  %vm77_vm2 = vcmask 523265   ;;  %s716_s3 = smov 64  }
  0x3a   :  { %v514_v10 = vpack.c.bf16 %v92_v8, %v91_v7  ;;  %v517_v14 = vpack.c.bf16 %v94_v12, %v93_v11  ;;  %v95_v15 = vld [vmem:[#allocation7 + $0x20] sm:$0xff]  ;;  %v96_v16 = vld [vmem:[#allocation7 + $0x28] sm:$0xff]  ;;  %v97_v20 = vld [vmem:[#allocation7 + $0x30] sm:$0xff]  ;;  %vm122_vm3 = vcmask 523264   ;;  %vm82_vm4 = vcmask 1048064   ;;  %s718_s7 = smov [#allocation10]  }
  0x3b   :  { %v71_v13 = vmax.f32 %v65_v5, %v70_v9  ;;  %v520_v19 = vpack.c.bf16 %v96_v16, %v95_v15  ;;  %v98_v21 = vld [vmem:[#allocation7 + $0x38] sm:$0xff]  ;;  %v226_v22 = vld [vmem:[#allocation9 + $0x80] sm:$0xff]  ;;  %v227_v23 = vld [vmem:[#allocation9 + $0x88] sm:$0xff]  ;;  %vm717_vm5 = vmmov 0   ;;  %s413_s8 = sshll.u32 %s718_s7, 4  ;;  %s414_s8 = int_to_ptr.vmem [resolvable:$true] %s413_s8 }
  0x3c   :  { %515 = vmatpush1.bf16.msra.mxu0 %v514_v10  ;;  %v549_v24 = vpack.c.bf16 %v227_v23, %v226_v22  ;;  %v210_v25 = vld [vmem:[#allocation9] sm:$0xff]  ;;  %v211_v26 = vld [vmem:[#allocation9 + $0x8] sm:$0xff]  ;;  %v228_v27 = vld [vmem:[#allocation9 + $0x90] sm:$0xff]  ;;  %v523_v32 = vpack.c.bf16 %v98_v21, %v97_v20  ;;  %s681_s9 = scalar_lea.vmem %s414_s8, 128  ;;  %p686_p11 = scmp.lt.s32.totalorder %s414_s8, %s414_s8 }
  0x3d   :  { %516 = vmatprep.subr.bf16.mxu0 %v714_v0  ;;  %v75_v17 = vrot.slane %v71_v13, 7  ;;  %79 = vrot.lane.b32.xlu0 %v71_v13, %s716_s3  ;;  %v84_v18 = vrot.slane %v71_v13, 1  ;;  %v551_v28 = vpack.c.bf16 %v211_v26, %v210_v25  ;;  %v229_v29 = vld [vmem:[#allocation9 + $0x98] sm:$0xff]  ;;  %v212_v30 = vld [vmem:[#allocation9 + $0x10] sm:$0xff]  ;;  %v230_v34 = vld [vmem:[#allocation9 + $0xa0] sm:$0xff]  ;;  %p682_p10 = scmp.ne.s32.totalorder %s414_s8, %s681_s9  ;;  %p687_p12 = scmp.lt.s32.totalorder %s681_s9, %s681_s9 }
  0x3e   :  { %v213_v31 = vld [vmem:[#allocation9 + $0x18] sm:$0xff]  ;;  %550 = vmatprep.subr.bf16.mxu1 %v549_v24  ;;  %v553_v33 = vpack.c.bf16 %v229_v29, %v228_v27  ;;  %v231_v35 = vld [vmem:[#allocation9 + $0xa8] sm:$0xff]  ;;  %v99_v36 = vld [vmem:[#allocation7 + $0x40] sm:$0xff] }
  0x3f   :  { %87 = vst.msk [vmem:[#allocation2 + $0x8] sm:$0x7f] %vm86_vm1, %v84_v18  ;;  %v100_v37 = vld [vmem:[#allocation7 + $0x48] sm:$0xff]  ;;  %552 = vmatpush3.bf16.msra.mxu1 %v551_v28  ;;  %v555_v38 = vpack.c.bf16 %v213_v31, %v212_v30  ;;  %v557_v39 = vpack.c.bf16 %v231_v35, %v230_v34  ;;  %v214_v40 = vld [vmem:[#allocation9 + $0x20] sm:$0xff]  ;;  %v232_v43 = vld [vmem:[#allocation9 + $0xb0] sm:$0xff]  ;;  %p688_p13 = por %p687_p12, %p686_p11 }
  0x40   :  { %518 = vmatpush1.bf16.msra.mxu0 %v517_v14  ;;  %78 = vst.msk [vmem:[#allocation2] sm:$0xfe] %vm77_vm2, %v75_v17  ;;  %554 = vmatprep.subr.bf16.mxu1 %v553_v33  ;;  %v215_v41 = vld [vmem:[#allocation9 + $0x28] sm:$0xff]  ;;  %v233_v44 = vld [vmem:[#allocation9 + $0xb8] sm:$0xff]  ;;  %v526_v45 = vpack.c.bf16 %v100_v37, %v99_v36  ;;  %v101_v46 = vld [vmem:[#allocation7 + $0x50] sm:$0xff] }
  0x41   :  { %519 = vmatprep.subr.bf16.mxu0 %v714_v0  ;;  %v102_v47 = vld [vmem:[#allocation7 + $0x58] sm:$0xff]  ;;  %v559_v48 = vpack.c.bf16 %v215_v41, %v214_v40  ;;  %v561_v49 = vpack.c.bf16 %v233_v44, %v232_v43  ;;  %v216_v50 = vld [vmem:[#allocation9 + $0x30] sm:$0xff]  ;;  %v234_v52 = vld [vmem:[#allocation9 + $0xc0] sm:$0xff]  ;;  %p689_p0 = pnand %p688_p13, %p682_p10 }
  0x42   :  { %v217_v51 = vld [vmem:[#allocation9 + $0x38] sm:$0xff]  ;;  %v235_v53 = vld [vmem:[#allocation9 + $0xc8] sm:$0xff]  ;;  %v529_v54 = vpack.c.bf16 %v102_v47, %v101_v46  ;;  %v103_v55 = vld [vmem:[#allocation7 + $0x60] sm:$0xff] }
  0x43   :  { %556 = vmatpush3.bf16.msra.mxu1 %v555_v38  ;;  %v104_v56 = vld [vmem:[#allocation7 + $0x68] sm:$0xff]  ;;  %v563_v57 = vpack.c.bf16 %v217_v51, %v216_v50  ;;  %v565_v58 = vpack.c.bf16 %v235_v53, %v234_v52  ;;  %v218_v59 = vld [vmem:[#allocation9 + $0x40] sm:$0xff]  ;;  %v105_v62 = vld [vmem:[#allocation7 + $0x70] sm:$0xff] }
  0x44   :  { %521 = vmatpush1.bf16.msra.mxu0 %v520_v19  ;;  %558 = vmatprep.subr.bf16.mxu1 %v557_v39  ;;  %v219_v60 = vld [vmem:[#allocation9 + $0x48] sm:$0xff]  ;;  %v532_v61 = vpack.c.bf16 %v104_v56, %v103_v55  ;;  %v106_v63 = vld [vmem:[#allocation7 + $0x78] sm:$0xff]  ;;  %v107_v4 = vld [vmem:[#allocation7 + $0x80] sm:$0xff] }
  0x45   :  { %522 = vmatprep.subr.bf16.mxu0 %v714_v0  ;;  %v567_v2 = vpack.c.bf16 %v219_v60, %v218_v59  ;;  %v535_v3 = vpack.c.bf16 %v106_v63, %v105_v62  ;;  %v108_v5 = vld [vmem:[#allocation7 + $0x88] sm:$0xff]  ;;  %v109_v7 = vld [vmem:[#allocation7 + $0x90] sm:$0xff]  ;;  %v110_v8 = vld [vmem:[#allocation7 + $0x98] sm:$0xff] }
  0x46   :  { %v90_v42 = vld [vmem:[#allocation2 + $0x8] sm:$0xff]  ;;  %v538_v6 = vpack.c.bf16 %v108_v5, %v107_v4  ;;  %v541_v9 = vpack.c.bf16 %v110_v8, %v109_v7  ;;  %v112_v11 = vld [vmem:[#allocation7 + $0xa8] sm:$0xff]  ;;  %v113_v13 = vld [vmem:[#allocation7 + $0xb0] sm:$0xff] }
  0x47   :  { %424 = vmatprep.mubr.msk.f32.mxu0 %vm122_vm3, %v90_v42  ;;  %560 = vmatpush3.bf16.msra.mxu1 %v559_v48  ;;  %v111_v10 = vld [vmem:[#allocation7 + $0xa0] sm:$0xff]  ;;  %v114_v14 = vld [vmem:[#allocation7 + $0xb8] sm:$0xff]  ;;  %v236_v18 = vld [vmem:[#allocation9 + $0xd0] sm:$0xff] }
  0x48   :  { %524 = vmatpush1.bf16.msra.mxu0 %v523_v32  ;;  %562 = vmatprep.subr.bf16.mxu1 %v561_v49  ;;  %v544_v12 = vpack.c.bf16 %v112_v11, %v111_v10  ;;  %v547_v15 = vpack.c.bf16 %v114_v14, %v113_v13  ;;  %v237_v19 = vld [vmem:[#allocation9 + $0xd8] sm:$0xff]  ;;  %v220_v21 = vld [vmem:[#allocation9 + $0x50] sm:$0xff]  ;;  %v238_v24 = vld [vmem:[#allocation9 + $0xe0] sm:$0xff] }
  0x49   :  { %525 = vmatprep.subr.bf16.mxu0 %v714_v0  ;;  %v569_v20 = vpack.c.bf16 %v237_v19, %v236_v18  ;;  %v221_v22 = vld [vmem:[#allocation9 + $0x58] sm:$0xff]  ;;  %v239_v25 = vld [vmem:[#allocation9 + $0xe8] sm:$0xff]  ;;  %v222_v27 = vld [vmem:[#allocation9 + $0x60] sm:$0xff] }
  0x4a   :  { %v571_v23 = vpack.c.bf16 %v221_v22, %v220_v21  ;;  %v573_v26 = vpack.c.bf16 %v239_v25, %v238_v24  ;;  %v223_v28 = vld [vmem:[#allocation9 + $0x68] sm:$0xff]  ;;  %v240_v30 = vld [vmem:[#allocation9 + $0xf0] sm:$0xff]  ;;  %v241_v31 = vld [vmem:[#allocation9 + $0xf8] sm:$0xff] }
  0x4b   :  { %564 = vmatpush3.bf16.msra.mxu1 %v563_v57  ;;  %v575_v29 = vpack.c.bf16 %v223_v28, %v222_v27  ;;  %v224_v32 = vld [vmem:[#allocation9 + $0x70] sm:$0xff]  ;;  %v577_v33 = vpack.c.bf16 %v241_v31, %v240_v30  ;;  %v225_v34 = vld [vmem:[#allocation9 + $0x78] sm:$0xff]  ;;  %v242_v43 = vld [vmem:[#allocation9 + $0x100] sm:$0xff] }
  0x4c   :  { %527 = vmatpush1.bf16.msra.mxu0 %v526_v45  ;;  %566 = vmatprep.subr.bf16.mxu1 %v565_v58  ;;  %v579_v35 = vpack.c.bf16 %v225_v34, %v224_v32  ;;  %v423_v36 = vld [vmem:[%s846_s2] ss:$0 sm:$0xff]  ;;  %v243_v44 = vld [vmem:[#allocation9 + $0x108] sm:$0xff]  ;;  %v244_v46 = vld [vmem:[#allocation9 + $0x110] sm:$0xff] }
  0x4d   :  { %528 = vmatprep.subr.bf16.mxu0 %v714_v0  ;;  %v582_v45 = vpack.c.bf16 %v243_v44, %v242_v43  ;;  %v245_v47 = vld [vmem:[#allocation9 + $0x118] sm:$0xff]  ;;  %v246_v50 = vld [vmem:[#allocation9 + $0x120] sm:$0xff]  ;;  %v247_v51 = vld [vmem:[#allocation9 + $0x128] sm:$0xff] }
  0x4e   :  { %v585_v49 = vpack.c.bf16 %v245_v47, %v244_v46  ;;  %v588_v52 = vpack.c.bf16 %v247_v51, %v246_v50  ;;  %v248_v53 = vld [vmem:[#allocation9 + $0x130] sm:$0xff]  ;;  %v250_v56 = vld [vmem:[#allocation9 + $0x140] sm:$0xff]  ;;  %v251_v57 = vld [vmem:[#allocation9 + $0x148] sm:$0xff] }
  0x4f   :  { %568 = vmatpush3.bf16.msra.mxu1 %v567_v2  ;;  %v594_v58 = vpack.c.bf16 %v251_v57, %v250_v56  ;;  %v253_v59 = vld [vmem:[#allocation9 + $0x158] sm:$0xff]  ;;  %v255_v62 = vld [vmem:[#allocation9 + $0x168] sm:$0xff]  ;;  %v256_v2 = vld [vmem:[#allocation9 + $0x170] sm:$0xff] }
  0x50   :  { %530 = vmatpush1.bf16.msra.mxu0 %v529_v54  ;;  %570 = vmatprep.subr.bf16.mxu1 %v569_v20  ;;  %v249_v54 = vld [vmem:[#allocation9 + $0x138] sm:$0xff] }
  0x51   :  { %531 = vmatprep.subr.bf16.mxu0 %v714_v0  ;;  %v591_v55 = vpack.c.bf16 %v249_v54, %v248_v53 }
  0x53   :  { %572 = vmatpush3.bf16.msra.mxu1 %v571_v23 }
  0x54   :  { %533 = vmatpush1.bf16.msra.mxu0 %v532_v61  ;;  %574 = vmatprep.subr.bf16.mxu1 %v573_v26  ;;  %v254_v61 = vld [vmem:[#allocation9 + $0x160] sm:$0xff] }
  0x55   :  { %534 = vmatprep.subr.bf16.mxu0 %v714_v0  ;;  %v600_v63 = vpack.c.bf16 %v255_v62, %v254_v61 }
  0x57   :  { %576 = vmatpush3.bf16.msra.mxu1 %v575_v29 }
  0x58   :  { %536 = vmatpush1.bf16.msra.mxu0 %v535_v3  ;;  %578 = vmatprep.subr.bf16.mxu1 %v577_v33  ;;  %v257_v3 = vld [vmem:[#allocation9 + $0x178] sm:$0xff] }
  0x59   :  { %537 = vmatprep.subr.bf16.mxu0 %v714_v0  ;;  %v603_v4 = vpack.c.bf16 %v257_v3, %v256_v2 }
  0x5b   :  { %580 = vmatpush3.bf16.msra.mxu1 %v579_v35 }
  0x5c   :  { %539 = vmatpush1.bf16.msra.mxu0 %v538_v6  ;;  %581 = vmatprep.subr.bf16.mxu1 %v714_v0 }
  0x5d   :  { %540 = vmatprep.subr.bf16.mxu0 %v714_v0 }
  0x60   :  { %542 = vmatpush1.bf16.msra.mxu0 %v541_v9  ;;  %v425_v9 = vld [vmem:[%s848_s4] ss:$0 sm:$0xff] }
  0x61   :  { %543 = vmatprep.subr.bf16.mxu0 %v714_v0 }
  0x64   :  { %545 = vmatpush1.bf16.msra.mxu0 %v544_v12 }
  0x65   :  { %546 = vmatprep.subr.bf16.mxu0 %v714_v0 }
  0x68   :  { %548 = vmatpush1.bf16.msra.mxu0 %v547_v15 }
  0xaf   :  { %v80_v16 = vpop.permute.xlu0 %79 }
  0xb0   :  { %83 = vst.msk [vmem:[#allocation2] sm:$0xff] %vm82_vm4, %v80_v16 }
  0xb7   :  { %v89_v17 = vld [vmem:[#allocation2] sm:$0xff] }
  0xb8   :  { %191 = vmatmul.mubr.f32.vlgmr.msra.gmra.mrb[0].mxu0 %v89_v17 }
 0x18b   :  { %v192_v37 = vpop.f32.mrb[0].mxu0 }
 0x18c   :  { %v193_v38 = vadd.f32 %v423_v36, %v192_v37  ;;  %v194_v39 = vpop.f32.mrb[1].mxu0 }
 0x18e   :  { %v196_v40 = vmax.f32 %v193_v38, 0.0 }
 0x190   :  { %v199_v41 = vrot.slane %v196_v40, 7  ;;  %v203_v42 = vrot.slane %v196_v40, 1  ;;  %329 = vmatprep.mubr.f32.mxu1 %v196_v40 }
 0x192   :  { %201 = vst [vmem:[#allocation3] sm:$0xfe] %v199_v41  ;;  %205 = vst [vmem:[#allocation3 + $0x10] sm:$0x7f] %v203_v42 }
 0x199   :  { %v207_v48 = vld [vmem:[#allocation3] sm:$0xff]  ;;  %v209_v5 = vld [vmem:[#allocation3 + $0x10] sm:$0xff] }
 0x19a   :  { %330 = vmatmul.mubr.f32.vlgmr.msra.gmra.mrb[0].mxu1 %v207_v48 }
 0x19b   :  { %583 = vmatpush3.bf16.msra.mxu1 %v582_v45  ;;  %510 = vmatprep.mubr.msk.f32.mxu1 %vm717_vm5, %v715_v1  ;;  %v252_v1 = vld [vmem:[#allocation9 + $0x150] sm:$0xff] }
 0x19c   :  { %584 = vmatprep.subr.bf16.mxu1 %v714_v0  ;;  %v597_v60 = vpack.c.bf16 %v253_v59, %v252_v1 }
 0x19f   :  { %586 = vmatpush3.bf16.msra.mxu1 %v585_v49 }
 0x1a0   :  { %587 = vmatprep.subr.bf16.mxu1 %v714_v0 }
 0x1a3   :  { %589 = vmatpush3.bf16.msra.mxu1 %v588_v52 }
 0x1a4   :  { %590 = vmatprep.subr.bf16.mxu1 %v714_v0 }
 0x1a7   :  { %592 = vmatpush3.bf16.msra.mxu1 %v591_v55 }
 0x1a8   :  { %593 = vmatprep.subr.bf16.mxu1 %v714_v0 }
 0x1ab   :  { %595 = vmatpush3.bf16.msra.mxu1 %v594_v58 }
 0x1ac   :  { %596 = vmatprep.subr.bf16.mxu1 %v714_v0 }
 0x1af   :  { %598 = vmatpush3.bf16.msra.mxu1 %v597_v60 }
 0x1b0   :  { %599 = vmatprep.subr.bf16.mxu1 %v714_v0 }
 0x1b3   :  { %601 = vmatpush3.bf16.msra.mxu1 %v600_v63 }
 0x1b4   :  { %602 = vmatprep.subr.bf16.mxu1 %v714_v0 }
 0x1b7   :  { %604 = vmatpush3.bf16.msra.mxu1 %v603_v4 }
 0x1ba   :  { %511 = vmatmul.mubr.f32.vlgmr.msra.gmra.mrb[2].mxu1 %v209_v5 }
 0x26d   :  { %v458_v6 = vpop.f32.mrb[0].mxu1 }
 0x26e   :  { %v459_v7 = vpop.f32.mrb[1].mxu1 }
 0x26f   :  { %v460_v8 = vadd.f32 %v459_v7, %v458_v6 }
 0x271   :  { %v332_v10 = vadd.f32 %v460_v8, %v425_v9 }
 0x28d   :  { %v401_v11 = vpop.f32.mrb[2].mxu1 }
 0x28e   :  { %v402_v12 = vadd.f32 %v401_v11, %v332_v10  ;;  %v512_v13 = vpop.f32.mrb[3].mxu1 }
 0x290   :  { %v405_v14 = vmax.f32 %v402_v12, 0.0 }
 0x292   :  { %406 = vst [vmem:[#allocation10] sm:$0xff] %v405_v14 }
 0x293   :  { %692 = shalt.err (!%p689_p0)
}
 0x294   :  { %s693_s4 = scalar_lea.hbm %s849_s5, 128 }
 0x295   :  { %p694_p1 = scmp.ne.s32.totalorder %s849_s5, %s693_s4  ;;  %p697_p2 = scmp.lt.u32.totalorder %s693_s4, %s849_s5 }
 0x297   :  { %p699_p3 = pnand %p697_p2, %p694_p1 }
 0x299   :  { %702 = shalt.err (!%p699_p3)
}
 0x29a   :  { %416 = dma.vmem_to_hbm [thread:$0]  %s414_s8, 128, %s849_s5, [#allocation6]  }
 0x29b   :  { %707 = dma.done.wait [#allocation6], 128  }
 0x29c   :  { %708 = vsyncadd [#allocation6], 4294967168 }
 0x29d   :  { %420 = vsyncpa [#allocation5], 1 }
 0x29e   :  { %421 = vsyncpa [#allocation8], 1 }
 0x29f   :  { %422 = vsyncpa [#allocation6], 1 }

</bundles_post_ra>
